<compile_context>
chip_gen: v6e
topology: v6e:2x2x1
jax: 0.10.0
libtpu: 0.0.40
codegen_flags: <defaults>
</compile_context>

<pallas_src>
import functools

import jax
import jax.numpy as jnp
from jax import lax
from jax.experimental import pallas as pl
from jax.experimental.pallas import tpu as pltpu
import numpy as np

NEG_SLOPE = 0.2  # LeakyReLU(relu=0.2)


def _round_up(v, m):
    return (v + m - 1) // m * m


def _lstm_disc_kernel(max_len_ref,                  # (1,)  i32  SMEM (scalar prefetch)
                      lens_ref,                     # (Bp, 1)      i32
                      x_ref,                        # (Tc*Bp, D+1) bf16 (chunk, ones col)
                      wih_ref,                      # (D+1, 4G)    bf16 [i,f,o,g], bias row
                      whh_ref,                      # (G, 4G)      bf16
                      wfc_ref,                      # (G, O)       f32
                      bfc_ref,                      # (1, O)       f32
                      out_ref,                      # (Bp, O)      f32
                      h_scr, c_scr, gx_scr,         # VMEM scratch (persist over grid)
                      *, unroll):
    chunk = pl.program_id(0)
    n_chunks = pl.num_programs(0)
    Bp, G = h_scr.shape
    Tc = gx_scr.shape[0] // Bp
    t0 = chunk * Tc
    max_len = max_len_ref[0]

    @pl.when(chunk == 0)
    def _init():
        h_scr[...] = jnp.zeros_like(h_scr)
        c_scr[...] = jnp.zeros_like(c_scr)

    # Skip compute for chunks entirely beyond the longest valid sequence
    # (their x DMA is also elided via the clamped index map).
    @pl.when(t0 < max_len)
    def _compute():
        # Hoisted input projection for the whole chunk; bias folded into the matmul
        # via the ones column / bias row.  Stored bf16 (halves VMEM + per-step vld).
        gx = jnp.dot(x_ref[...], wih_ref[...], preferred_element_type=jnp.float32)
        gx_scr[...] = gx.astype(gx_scr.dtype)

        whh = whh_ref[...]                          # (G, 4G) bf16
        lens = lens_ref[...]                        # (Bp, 1) i32

        def step(t, carry):
            h, c = carry                            # f32 (Bp, G)
            row = pl.multiple_of(t * Bp, Bp)
            # TODO(synk): h is re-quantized to bf16 each step for the MXU; rounding
            #             compounds over very long sequences (fine at these lengths).
            gates = (gx_scr[pl.ds(row, Bp), :].astype(jnp.float32)
                     + jnp.dot(h.astype(whh.dtype), whh,
                               preferred_element_type=jnp.float32))    # (Bp, 4G) f32
            # Gate layout [i|f|o|g] with stride G: one sigmoid over the i|f|o slab,
            # one tanh over g -- sized to the valid gate lanes only.
            sig = jax.nn.sigmoid(gates[:, 0:3 * G])
            i_g = sig[:, 0:G]
            f_g = sig[:, G:2 * G]
            o_g = sig[:, 2 * G:3 * G]
            g_g = jnp.tanh(gates[:, 3 * G:4 * G])
            c_new = f_g * c + i_g * g_g
            h_new = o_g * jnp.tanh(c_new)
            # pack_padded_sequence semantics: freeze the state once t >= len.
            valid = (t0 + t) < lens                 # (Bp, 1) bool
            return (jnp.where(valid, h_new, h),
                    jnp.where(valid, c_new, c))

        h_fin, c_fin = lax.fori_loop(0, Tc, step, (h_scr[...], c_scr[...]),
                                     unroll=unroll)
        h_scr[...] = h_fin
        c_scr[...] = c_fin

    @pl.when(chunk == n_chunks - 1)
    def _finalize():
        h = h_scr[...]
        act = jnp.where(h > 0, h, NEG_SLOPE * h)    # LeakyReLU(0.2)
        # TODO(synk): nn.Dropout(p=0.2) is stochastic in train mode; eval-mode identity here.
        logits = jnp.dot(act, wfc_ref[...],
                         preferred_element_type=jnp.float32) + bfc_ref[...]
        out_ref[...] = logits.astype(out_ref.dtype)


def _pack_gate_matrix(w, H, G, n_rows):
    """PyTorch (4H, In) weight (gate rows [i,f,g,o]) -> (n_rows, 4G), cols [i,f,o,g]."""
    In = w.shape[1]
    parts = []
    for g in (0, 1, 3, 2):                          # i, f, o, g
        blk = jnp.transpose(w[g * H:(g + 1) * H])   # (In, H)
        parts.append(jnp.pad(blk, ((0, n_rows - In), (0, G - H))))
    return jnp.concatenate(parts, axis=1)


def _pack_gate_vector(b, H, G):
    parts = [jnp.pad(b[g * H:(g + 1) * H], (0, G - H)) for g in (0, 1, 3, 2)]
    return jnp.concatenate(parts).reshape(1, 4 * G)


def _auto_time_chunk(T, Bp, D, G):
    """Tc*Bp >= 256 (MXU M dim on v6e/v7x) within a ~24 MiB v7x-safe streaming budget."""
    tc = min(T, max(1, 256 // Bp))
    per_t = Bp * (2 * (D + 1) * 2      # x chunk bf16, double-buffered
                  + 4 * G * 2)         # gx scratch bf16
    budget = 24 * (1 << 20)
    while tc > 1 and tc * per_t > budget:
        tc = (tc + 1) // 2
    return max(1, tc)


def lstm_discriminator_forward(x, out_len, params, *, time_chunk=None):
    """x: (B, T, D) f32, out_len: (B,) int. Returns (B,) f32 (out=1 squeezed)."""
    B, T, D = x.shape
    H = params["w_hh"].shape[1]
    O = params["w_fc"].shape[0]

    # Gate lane stride: contiguous (G = H) when 4H is 128-aligned, else pad per gate.
    G = H if (4 * H) % 128 == 0 else _round_up(H, 128)
    Bp = _round_up(B, 8)                            # sublane-aligned batch

    if time_chunk is None:
        Tc = _auto_time_chunk(T, Bp, D, G)
    else:
        Tc = max(1, min(int(time_chunk), T))
    n_chunks = -(-T // Tc)
    Tp = n_chunks * Tc

    # ---- glue: layout / parameter packing only (all compute is in the kernel) ----
    x_tm = jnp.transpose(x, (1, 0, 2))                                  # (T, B, D)
    x_tm = jnp.pad(x_tm, ((0, Tp - T), (0, Bp - B), (0, 0)))
    ones = jnp.ones((Tp, Bp, 1), x_tm.dtype)                            # bias column
    x_flat = jnp.concatenate([x_tm, ones], axis=-1)
    x_flat = x_flat.reshape(Tp * Bp, D + 1).astype(jnp.bfloat16)        # (Tp*Bp, D+1)

    wih_core = _pack_gate_matrix(params["w_ih"], H, G, D)               # (D, 4G)
    bias_row = _pack_gate_vector(params["b_ih"] + params["b_hh"], H, G)  # (1, 4G)
    wih_p = jnp.concatenate([wih_core, bias_row], axis=0).astype(jnp.bfloat16)  # (D+1, 4G)
    whh_p = _pack_gate_matrix(params["w_hh"], H, G, G).astype(jnp.bfloat16)     # (G, 4G)
    wfc_p = jnp.pad(jnp.transpose(params["w_fc"]),
                    ((0, G - H), (0, 0))).astype(jnp.float32)           # (G, O)
    bfc_p = params["b_fc"].reshape(1, O).astype(jnp.float32)

    lens_c = jnp.clip(out_len.astype(jnp.int32), 0, T)
    lens = jnp.pad(lens_c, (0, Bp - B)).reshape(Bp, 1)
    max_len = jnp.max(lens_c).reshape(1)

    # x chunk index clamped by max_len: chunks past the longest sequence reuse the last
    # valid block index, so Pallas skips their DMA entirely (compute skipped by pl.when).
    def x_index_map(t, ml):
        last = jnp.maximum(pl.cdiv(ml[0], Tc) - 1, 0)
        return (jnp.minimum(t, last), 0)

    const = lambda t, ml: (0, 0)
    single = pl.Buffered(1)                         # grid-invariant -> no double buffer

    grid_spec = pltpu.PrefetchScalarGridSpec(
        num_scalar_prefetch=1,
        grid=(n_chunks,),
        in_specs=[
            pl.BlockSpec((Bp, 1), const, pipeline_mode=single),          # lens
            pl.BlockSpec((Tc * Bp, D + 1), x_index_map),                 # x chunk (streamed)
            pl.BlockSpec((D + 1, 4 * G), const, pipeline_mode=single),   # W_ih^T (+bias row)
            pl.BlockSpec((G, 4 * G), const, pipeline_mode=single),       # W_hh^T
            pl.BlockSpec((G, O), const, pipeline_mode=single),           # fc2 weight^T
            pl.BlockSpec((1, O), const, pipeline_mode=single),           # fc2 bias
        ],
        out_specs=pl.BlockSpec((Bp, O), const),
        scratch_shapes=[
            pltpu.VMEM((Bp, G), jnp.float32),                # h state (persists over grid)
            pltpu.VMEM((Bp, G), jnp.float32),                # c state
            pltpu.VMEM((Tc * Bp, 4 * G), jnp.bfloat16),      # per-chunk input projection
        ],
    )

    # Explicit VMEM budget: actual working set + headroom, capped below the per-core
    # ceiling (64 MiB on v7x) so the same config compiles across generations.
    needed = (
        2 * Tc * Bp * (D + 1) * 2          # x chunk, double-buffered, bf16
        + (D + 1) * 4 * G * 2              # W_ih (+bias row), single buffer
        + G * 4 * G * 2                    # W_hh
        + G * max(O, 128) * 4              # fc2 weight (lane padded)
        + Tc * Bp * 4 * G * 2              # gx scratch (bf16)
        + 2 * Bp * G * 4                   # h/c state
        + 4 * Bp * 128 * 4                 # lens / out / bias tiles (lane padded)
    )
    try:
        vmem_cap = int(pltpu.get_tpu_info().vmem_capacity_bytes)
    except Exception:
        vmem_cap = 64 * (1 << 20)
    vmem_limit = int(min(max(int(needed * 1.3) + (4 << 20), 32 << 20),
                         vmem_cap - (4 << 20)))

    kernel = functools.partial(_lstm_disc_kernel, unroll=min(Tc, 8))

    out = pl.pallas_call(
        kernel,
        out_shape=jax.ShapeDtypeStruct((Bp, O), jnp.float32),
        grid_spec=grid_spec,
        compiler_params=pltpu.CompilerParams(
            dimension_semantics=("arbitrary",),     # sequential time recurrence
            vmem_limit_bytes=vmem_limit),
    )(max_len, lens, x_flat, wih_p, whh_p, wfc_p, bfc_p)

    res = out[:B]
    if O == 1:
        res = res[:, 0]                             # .squeeze(dim=-1)
    return res


def _reference_forward(x, out_len, params):
    """Pure-JAX f32 reference of the same forward pass (for verification)."""
    B, T, D = x.shape
    H = params["w_hh"].shape[1]
    wih_t = params["w_ih"].T
    whh_t = params["w_hh"].T
    b = params["b_ih"] + params["b_hh"]

    def step(carry, inp):
        h, c = carry
        xt, t = inp
        gates = xt @ wih_t + h @ whh_t + b
        i_g = jax.nn.sigmoid(gates[:, :H])
        f_g = jax.nn.sigmoid(gates[:, H:2 * H])
        g_g = jnp.tanh(gates[:, 2 * H:3 * H])
        o_g = jax.nn.sigmoid(gates[:, 3 * H:])
        c_new = f_g * c + i_g * g_g
        h_new = o_g * jnp.tanh(c_new)
        valid = (t < out_len)[:, None]
        return (jnp.where(valid, h_new, h), jnp.where(valid, c_new, c)), None

    x_tm = jnp.transpose(x, (1, 0, 2))
    (h, _), _ = lax.scan(step, (jnp.zeros((B, H)), jnp.zeros((B, H))),
                         (x_tm, jnp.arange(T)))
    act = jnp.where(h > 0, h, NEG_SLOPE * h)
    return (act @ params["w_fc"].T + params["b_fc"]).squeeze(-1)


def init_params(key, d_in, hidden, out=1):
    """Deterministic init, PyTorch-style U(-1/sqrt(H), 1/sqrt(H))."""
    ks = jax.random.split(key, 6)
    k = 1.0 / np.sqrt(hidden)
    u = lambda kk, shape: jax.random.uniform(kk, shape, jnp.float32, -k, k)
    return {
        "w_ih": u(ks[0], (4 * hidden, d_in)),
        "w_hh": u(ks[1], (4 * hidden, hidden)),
        "b_ih": u(ks[2], (4 * hidden,)),
        "b_hh": u(ks[3], (4 * hidden,)),
        "w_fc": u(ks[4], (out, hidden)),
        "b_fc": u(ks[5], (out,)),
    }


if __name__ == "__main__":
    B, T, D, H = 2, 8, 16, 32  # batch, seq, d_in, hidden

    key = jax.random.PRNGKey(0)
    k_x, k_p = jax.random.split(key)
    x = jax.random.normal(k_x, (B, T, D), jnp.float32)
    params = init_params(k_p, D, H, out=1)

    # Three configurations: partial lengths over 2 chunks, lengths short enough that the
    # second chunk is skipped (exercises compute skip + clamped-DMA path), and the
    # auto-sized chunk default.
    cases = [
        (jnp.array([T, 5], jnp.int32), 4),
        (jnp.array([3, 2], jnp.int32), 4),
        (jnp.array([T, 5], jnp.int32), None),
    ]
    for out_len, tc in cases:
        y = lstm_discriminator_forward(x, out_len, params, time_chunk=tc)
        y = jax.block_until_ready(y)
        y_ref = _reference_forward(x, out_len, params)
        # bf16 MXU operands (f32 accumulation) -> loosened tolerance vs. the f32 reference.
        np.testing.assert_allclose(np.asarray(y), np.asarray(y_ref), rtol=3e-2, atol=3e-2)
        assert y.shape == (B,)

    print("KERNEL_OK")
</pallas_src>

<mosaic_0001>
module attributes {stable_mosaic.version = 11 : i64} {
  func.func @_lstm_disc_kernel(%arg0: i32, %arg1: memref<1xi32, #tpu.memory_space<smem>>, %arg2: memref<8x1xi32, #tpu.memory_space<vmem>>, %arg3: memref<32x17xbf16, #tpu.memory_space<vmem>>, %arg4: memref<17x128xbf16, #tpu.memory_space<vmem>>, %arg5: memref<32x128xbf16, #tpu.memory_space<vmem>>, %arg6: memref<32x1xf32, #tpu.memory_space<vmem>>, %arg7: memref<1x1xf32, #tpu.memory_space<vmem>>, %arg8: memref<8x1xf32, #tpu.memory_space<vmem>>, %arg9: memref<8x32xf32, #tpu.memory_space<vmem>>, %arg10: memref<8x32xf32, #tpu.memory_space<vmem>>, %arg11: memref<32x128xbf16, #tpu.memory_space<vmem>>) attributes {dimension_semantics = [#tpu.dimension_semantics<arbitrary>], iteration_bounds = array<i64: 2>, scalar_prefetch = 1 : i64, scratch_operands = 3 : i64, tpu.core_type = #tpu.core_type<tc>, window_params = [{pipeline_mode = #tpu.pipeline_mode<synchronous>, transform_indices = @transform_0, window_bounds = array<i64: 8, 1>}, {transform_indices = @transform_1, window_bounds = array<i64: 32, 17>}, {pipeline_mode = #tpu.pipeline_mode<synchronous>, transform_indices = @transform_2, window_bounds = array<i64: 17, 128>}, {pipeline_mode = #tpu.pipeline_mode<synchronous>, transform_indices = @transform_3, window_bounds = array<i64: 32, 128>}, {pipeline_mode = #tpu.pipeline_mode<synchronous>, transform_indices = @transform_4, window_bounds = array<i64: 32, 1>}, {pipeline_mode = #tpu.pipeline_mode<synchronous>, transform_indices = @transform_5, window_bounds = array<i64: 1, 1>}, {pipeline_mode = #tpu.pipeline_mode<synchronous>, transform_indices = @transform_6, window_bounds = array<i64: 8, 1>}]} {
    %c4_i32 = arith.constant 4 : i32
    %0 = arith.muli %arg0, %c4_i32 : i32
    %c0 = arith.constant 0 : index
    %1 = memref.load %arg1[%c0] : memref<1xi32, #tpu.memory_space<smem>>
    %c0_i32 = arith.constant 0 : i32
    %2 = arith.cmpi eq, %arg0, %c0_i32 : i32
    %3 = arith.extui %2 : i1 to i32
    %c0_i32_0 = arith.constant 0 : i32
    %4 = arith.cmpi ne, %3, %c0_i32_0 : i32
    scf.if %4 {
      %cst = arith.constant 0.000000e+00 : f32
      %11 = vector.broadcast %cst : f32 to vector<8x32xf32>
      %c0_3 = arith.constant 0 : index
      %c0_4 = arith.constant 0 : index
      %12 = vector.load %arg9[%c0_3, %c0_4] : memref<8x32xf32, #tpu.memory_space<vmem>>, vector<8x32xf32>
      tpu.vector_store %arg9[%c0_3, %c0_4], %11 {strides = array<i32>} : memref<8x32xf32, #tpu.memory_space<vmem>>, vector<8x32xf32>,
      %cst_5 = arith.constant 0.000000e+00 : f32
      %13 = vector.broadcast %cst_5 : f32 to vector<8x32xf32>
      %c0_6 = arith.constant 0 : index
      %c0_7 = arith.constant 0 : index
      %14 = vector.load %arg10[%c0_6, %c0_7] : memref<8x32xf32, #tpu.memory_space<vmem>>, vector<8x32xf32>
      tpu.vector_store %arg10[%c0_6, %c0_7], %13 {strides = array<i32>} : memref<8x32xf32, #tpu.memory_space<vmem>>, vector<8x32xf32>,
    } else {
    }
    %5 = arith.cmpi slt, %0, %1 : i32
    %6 = arith.extui %5 : i1 to i32
    %c0_i32_1 = arith.constant 0 : i32
    %7 = arith.cmpi ne, %6, %c0_i32_1 : i32
    scf.if %7 {
      %c0_3 = arith.constant 0 : index
      %c0_4 = arith.constant 0 : index
      %11 = vector.load %arg3[%c0_3, %c0_4] : memref<32x17xbf16, #tpu.memory_space<vmem>>, vector<32x17xbf16>
      %c0_5 = arith.constant 0 : index
      %c0_6 = arith.constant 0 : index
      %12 = vector.load %arg4[%c0_5, %c0_6] : memref<17x128xbf16, #tpu.memory_space<vmem>>, vector<17x128xbf16>
      %cst = arith.constant dense<0.000000e+00> : vector<32x128xf32>
      %13 = tpu.matmul %11, %12, %cst {dimension_numbers = #tpu.dot_dimension_numbers<[1], [0], [0], [1], [0, 0, 1, 1], [], []>} : vector<32x17xbf16>, vector<17x128xbf16>, vector<32x128xf32> -> vector<32x128xf32>
      %14 = arith.truncf %13 : vector<32x128xf32> to vector<32x128xbf16>
      %c0_7 = arith.constant 0 : index
      %c0_8 = arith.constant 0 : index
      %15 = vector.load %arg11[%c0_7, %c0_8] : memref<32x128xbf16, #tpu.memory_space<vmem>>, vector<32x128xbf16>
      tpu.vector_store %arg11[%c0_7, %c0_8], %14 {strides = array<i32>} : memref<32x128xbf16, #tpu.memory_space<vmem>>, vector<32x128xbf16>,
      %c0_9 = arith.constant 0 : index
      %c0_10 = arith.constant 0 : index
      %16 = vector.load %arg5[%c0_9, %c0_10] : memref<32x128xbf16, #tpu.memory_space<vmem>>, vector<32x128xbf16>
      %c0_11 = arith.constant 0 : index
      %c0_12 = arith.constant 0 : index
      %17 = vector.load %arg2[%c0_11, %c0_12] : memref<8x1xi32, #tpu.memory_space<vmem>>, vector<8x1xi32>
      %c0_13 = arith.constant 0 : index
      %c0_14 = arith.constant 0 : index
      %18 = vector.load %arg9[%c0_13, %c0_14] : memref<8x32xf32, #tpu.memory_space<vmem>>, vector<8x32xf32>
      %c0_15 = arith.constant 0 : index
      %c0_16 = arith.constant 0 : index
      %19 = vector.load %arg10[%c0_15, %c0_16] : memref<8x32xf32, #tpu.memory_space<vmem>>, vector<8x32xf32>
      %c0_i32_17 = arith.constant 0 : i32
      %c8_i32 = arith.constant 8 : i32
      %20 = arith.muli %c0_i32_17, %c8_i32 : i32
      %21 = tpu.assume_multiple %20, 8 : i32
      %22 = arith.index_cast %21 : i32 to index
      %c0_18 = arith.constant 0 : index
      %23 = vector.load %arg11[%22, %c0_18] : memref<32x128xbf16, #tpu.memory_space<vmem>>, vector<8x128xbf16>
      %24 = arith.extf %23 : vector<8x128xbf16> to vector<8x128xf32>
      %25 = arith.truncf %18 : vector<8x32xf32> to vector<8x32xbf16>
      %cst_19 = arith.constant dense<0.000000e+00> : vector<8x128xf32>
      %26 = tpu.matmul %25, %16, %cst_19 {dimension_numbers = #tpu.dot_dimension_numbers<[1], [0], [0], [1], [0, 0, 1, 1], [], []>} : vector<8x32xbf16>, vector<32x128xbf16>, vector<8x128xf32> -> vector<8x128xf32>
      %27 = arith.addf %24, %26 : vector<8x128xf32>
      %28 = vector.extract_strided_slice %27 {offsets = [0, 0], sizes = [8, 96], strides = [1, 1]} : vector<8x128xf32> to vector<8x96xf32>
      %29 = arith.negf %28 : vector<8x96xf32>
      %30 = math.exp %29 : vector<8x96xf32>
      %cst_20 = arith.constant 1.000000e+00 : f32
      %31 = vector.broadcast %cst_20 : f32 to vector<8x96xf32>
      %32 = arith.addf %31, %30 : vector<8x96xf32>
      %33 = arith.divf %31, %32 : vector<8x96xf32>
      %34 = vector.extract_strided_slice %33 {offsets = [0, 0], sizes = [8, 32], strides = [1, 1]} : vector<8x96xf32> to vector<8x32xf32>
      %35 = vector.extract_strided_slice %33 {offsets = [0, 32], sizes = [8, 32], strides = [1, 1]} : vector<8x96xf32> to vector<8x32xf32>
      %36 = vector.extract_strided_slice %33 {offsets = [0, 64], sizes = [8, 32], strides = [1, 1]} : vector<8x96xf32> to vector<8x32xf32>
      %37 = vector.extract_strided_slice %27 {offsets = [0, 96], sizes = [8, 32], strides = [1, 1]} : vector<8x128xf32> to vector<8x32xf32>
      %38 = math.tanh %37 : vector<8x32xf32>
      %39 = arith.mulf %35, %19 : vector<8x32xf32>
      %40 = arith.mulf %34, %38 : vector<8x32xf32>
      %41 = arith.addf %39, %40 : vector<8x32xf32>
      %42 = math.tanh %41 : vector<8x32xf32>
      %43 = arith.mulf %36, %42 : vector<8x32xf32>
      %44 = arith.addi %0, %c0_i32_17 : i32
      %45 = vector.broadcast %44 : i32 to vector<8x1xi32>
      %46 = arith.cmpi slt, %45, %17 : vector<8x1xi32>
      %47 = vector.shape_cast %46 : vector<8x1xi1> to vector<8x1xi1>
      %48 = vector.broadcast %47 : vector<8x1xi1> to vector<8x32xi1>
      %49 = arith.select %48, %43, %18 : vector<8x32xi1>, vector<8x32xf32>
      %50 = vector.shape_cast %46 : vector<8x1xi1> to vector<8x1xi1>
      %51 = vector.broadcast %50 : vector<8x1xi1> to vector<8x32xi1>
      %52 = arith.select %51, %41, %19 : vector<8x32xi1>, vector<8x32xf32>
      %c1_i32_21 = arith.constant 1 : i32
      %c8_i32_22 = arith.constant 8 : i32
      %53 = arith.muli %c1_i32_21, %c8_i32_22 : i32
      %54 = tpu.assume_multiple %53, 8 : i32
      %55 = arith.index_cast %54 : i32 to index
      %c0_23 = arith.constant 0 : index
      %56 = vector.load %arg11[%55, %c0_23] : memref<32x128xbf16, #tpu.memory_space<vmem>>, vector<8x128xbf16>
      %57 = arith.extf %56 : vector<8x128xbf16> to vector<8x128xf32>
      %58 = arith.truncf %49 : vector<8x32xf32> to vector<8x32xbf16>
      %cst_24 = arith.constant dense<0.000000e+00> : vector<8x128xf32>
      %59 = tpu.matmul %58, %16, %cst_24 {dimension_numbers = #tpu.dot_dimension_numbers<[1], [0], [0], [1], [0, 0, 1, 1], [], []>} : vector<8x32xbf16>, vector<32x128xbf16>, vector<8x128xf32> -> vector<8x128xf32>
      %60 = arith.addf %57, %59 : vector<8x128xf32>
      %61 = vector.extract_strided_slice %60 {offsets = [0, 0], sizes = [8, 96], strides = [1, 1]} : vector<8x128xf32> to vector<8x96xf32>
      %62 = arith.negf %61 : vector<8x96xf32>
      %63 = math.exp %62 : vector<8x96xf32>
      %cst_25 = arith.constant 1.000000e+00 : f32
      %64 = vector.broadcast %cst_25 : f32 to vector<8x96xf32>
      %65 = arith.addf %64, %63 : vector<8x96xf32>
      %66 = arith.divf %64, %65 : vector<8x96xf32>
      %67 = vector.extract_strided_slice %66 {offsets = [0, 0], sizes = [8, 32], strides = [1, 1]} : vector<8x96xf32> to vector<8x32xf32>
      %68 = vector.extract_strided_slice %66 {offsets = [0, 32], sizes = [8, 32], strides = [1, 1]} : vector<8x96xf32> to vector<8x32xf32>
      %69 = vector.extract_strided_slice %66 {offsets = [0, 64], sizes = [8, 32], strides = [1, 1]} : vector<8x96xf32> to vector<8x32xf32>
      %70 = vector.extract_strided_slice %60 {offsets = [0, 96], sizes = [8, 32], strides = [1, 1]} : vector<8x128xf32> to vector<8x32xf32>
      %71 = math.tanh %70 : vector<8x32xf32>
      %72 = arith.mulf %68, %52 : vector<8x32xf32>
      %73 = arith.mulf %67, %71 : vector<8x32xf32>
      %74 = arith.addf %72, %73 : vector<8x32xf32>
      %75 = math.tanh %74 : vector<8x32xf32>
      %76 = arith.mulf %69, %75 : vector<8x32xf32>
      %77 = arith.addi %0, %c1_i32_21 : i32
      %78 = vector.broadcast %77 : i32 to vector<8x1xi32>
      %79 = arith.cmpi slt, %78, %17 : vector<8x1xi32>
      %80 = vector.shape_cast %79 : vector<8x1xi1> to vector<8x1xi1>
      %81 = vector.broadcast %80 : vector<8x1xi1> to vector<8x32xi1>
      %82 = arith.select %81, %76, %49 : vector<8x32xi1>, vector<8x32xf32>
      %83 = vector.shape_cast %79 : vector<8x1xi1> to vector<8x1xi1>
      %84 = vector.broadcast %83 : vector<8x1xi1> to vector<8x32xi1>
      %85 = arith.select %84, %74, %52 : vector<8x32xi1>, vector<8x32xf32>
      %c2_i32 = arith.constant 2 : i32
      %c8_i32_26 = arith.constant 8 : i32
      %86 = arith.muli %c2_i32, %c8_i32_26 : i32
      %87 = tpu.assume_multiple %86, 8 : i32
      %88 = arith.index_cast %87 : i32 to index
      %c0_27 = arith.constant 0 : index
      %89 = vector.load %arg11[%88, %c0_27] : memref<32x128xbf16, #tpu.memory_space<vmem>>, vector<8x128xbf16>
      %90 = arith.extf %89 : vector<8x128xbf16> to vector<8x128xf32>
      %91 = arith.truncf %82 : vector<8x32xf32> to vector<8x32xbf16>
      %cst_28 = arith.constant dense<0.000000e+00> : vector<8x128xf32>
      %92 = tpu.matmul %91, %16, %cst_28 {dimension_numbers = #tpu.dot_dimension_numbers<[1], [0], [0], [1], [0, 0, 1, 1], [], []>} : vector<8x32xbf16>, vector<32x128xbf16>, vector<8x128xf32> -> vector<8x128xf32>
      %93 = arith.addf %90, %92 : vector<8x128xf32>
      %94 = vector.extract_strided_slice %93 {offsets = [0, 0], sizes = [8, 96], strides = [1, 1]} : vector<8x128xf32> to vector<8x96xf32>
      %95 = arith.negf %94 : vector<8x96xf32>
      %96 = math.exp %95 : vector<8x96xf32>
      %cst_29 = arith.constant 1.000000e+00 : f32
      %97 = vector.broadcast %cst_29 : f32 to vector<8x96xf32>
      %98 = arith.addf %97, %96 : vector<8x96xf32>
      %99 = arith.divf %97, %98 : vector<8x96xf32>
      %100 = vector.extract_strided_slice %99 {offsets = [0, 0], sizes = [8, 32], strides = [1, 1]} : vector<8x96xf32> to vector<8x32xf32>
      %101 = vector.extract_strided_slice %99 {offsets = [0, 32], sizes = [8, 32], strides = [1, 1]} : vector<8x96xf32> to vector<8x32xf32>
      %102 = vector.extract_strided_slice %99 {offsets = [0, 64], sizes = [8, 32], strides = [1, 1]} : vector<8x96xf32> to vector<8x32xf32>
      %103 = vector.extract_strided_slice %93 {offsets = [0, 96], sizes = [8, 32], strides = [1, 1]} : vector<8x128xf32> to vector<8x32xf32>
      %104 = math.tanh %103 : vector<8x32xf32>
      %105 = arith.mulf %101, %85 : vector<8x32xf32>
      %106 = arith.mulf %100, %104 : vector<8x32xf32>
      %107 = arith.addf %105, %106 : vector<8x32xf32>
      %108 = math.tanh %107 : vector<8x32xf32>
      %109 = arith.mulf %102, %108 : vector<8x32xf32>
      %110 = arith.addi %0, %c2_i32 : i32
      %111 = vector.broadcast %110 : i32 to vector<8x1xi32>
      %112 = arith.cmpi slt, %111, %17 : vector<8x1xi32>
      %113 = vector.shape_cast %112 : vector<8x1xi1> to vector<8x1xi1>
      %114 = vector.broadcast %113 : vector<8x1xi1> to vector<8x32xi1>
      %115 = arith.select %114, %109, %82 : vector<8x32xi1>, vector<8x32xf32>
      %116 = vector.shape_cast %112 : vector<8x1xi1> to vector<8x1xi1>
      %117 = vector.broadcast %116 : vector<8x1xi1> to vector<8x32xi1>
      %118 = arith.select %117, %107, %85 : vector<8x32xi1>, vector<8x32xf32>
      %c3_i32 = arith.constant 3 : i32
      %c8_i32_30 = arith.constant 8 : i32
      %119 = arith.muli %c3_i32, %c8_i32_30 : i32
      %120 = tpu.assume_multiple %119, 8 : i32
      %121 = arith.index_cast %120 : i32 to index
      %c0_31 = arith.constant 0 : index
      %122 = vector.load %arg11[%121, %c0_31] : memref<32x128xbf16, #tpu.memory_space<vmem>>, vector<8x128xbf16>
      %123 = arith.extf %122 : vector<8x128xbf16> to vector<8x128xf32>
      %124 = arith.truncf %115 : vector<8x32xf32> to vector<8x32xbf16>
      %cst_32 = arith.constant dense<0.000000e+00> : vector<8x128xf32>
      %125 = tpu.matmul %124, %16, %cst_32 {dimension_numbers = #tpu.dot_dimension_numbers<[1], [0], [0], [1], [0, 0, 1, 1], [], []>} : vector<8x32xbf16>, vector<32x128xbf16>, vector<8x128xf32> -> vector<8x128xf32>
      %126 = arith.addf %123, %125 : vector<8x128xf32>
      %127 = vector.extract_strided_slice %126 {offsets = [0, 0], sizes = [8, 96], strides = [1, 1]} : vector<8x128xf32> to vector<8x96xf32>
      %128 = arith.negf %127 : vector<8x96xf32>
      %129 = math.exp %128 : vector<8x96xf32>
      %cst_33 = arith.constant 1.000000e+00 : f32
      %130 = vector.broadcast %cst_33 : f32 to vector<8x96xf32>
      %131 = arith.addf %130, %129 : vector<8x96xf32>
      %132 = arith.divf %130, %131 : vector<8x96xf32>
      %133 = vector.extract_strided_slice %132 {offsets = [0, 0], sizes = [8, 32], strides = [1, 1]} : vector<8x96xf32> to vector<8x32xf32>
      %134 = vector.extract_strided_slice %132 {offsets = [0, 32], sizes = [8, 32], strides = [1, 1]} : vector<8x96xf32> to vector<8x32xf32>
      %135 = vector.extract_strided_slice %132 {offsets = [0, 64], sizes = [8, 32], strides = [1, 1]} : vector<8x96xf32> to vector<8x32xf32>
      %136 = vector.extract_strided_slice %126 {offsets = [0, 96], sizes = [8, 32], strides = [1, 1]} : vector<8x128xf32> to vector<8x32xf32>
      %137 = math.tanh %136 : vector<8x32xf32>
      %138 = arith.mulf %134, %118 : vector<8x32xf32>
      %139 = arith.mulf %133, %137 : vector<8x32xf32>
      %140 = arith.addf %138, %139 : vector<8x32xf32>
      %141 = math.tanh %140 : vector<8x32xf32>
      %142 = arith.mulf %135, %141 : vector<8x32xf32>
      %143 = arith.addi %0, %c3_i32 : i32
      %144 = vector.broadcast %143 : i32 to vector<8x1xi32>
      %145 = arith.cmpi slt, %144, %17 : vector<8x1xi32>
      %146 = vector.shape_cast %145 : vector<8x1xi1> to vector<8x1xi1>
      %147 = vector.broadcast %146 : vector<8x1xi1> to vector<8x32xi1>
      %148 = arith.select %147, %142, %115 : vector<8x32xi1>, vector<8x32xf32>
      %149 = vector.shape_cast %145 : vector<8x1xi1> to vector<8x1xi1>
      %150 = vector.broadcast %149 : vector<8x1xi1> to vector<8x32xi1>
      %151 = arith.select %150, %140, %118 : vector<8x32xi1>, vector<8x32xf32>
      %c4_i32_34 = arith.constant 4 : i32
      %c0_35 = arith.constant 0 : index
      %c0_36 = arith.constant 0 : index
      %152 = vector.load %arg9[%c0_35, %c0_36] : memref<8x32xf32, #tpu.memory_space<vmem>>, vector<8x32xf32>
      tpu.vector_store %arg9[%c0_35, %c0_36], %148 {strides = array<i32>} : memref<8x32xf32, #tpu.memory_space<vmem>>, vector<8x32xf32>,
      %c0_37 = arith.constant 0 : index
      %c0_38 = arith.constant 0 : index
      %153 = vector.load %arg10[%c0_37, %c0_38] : memref<8x32xf32, #tpu.memory_space<vmem>>, vector<8x32xf32>
      tpu.vector_store %arg10[%c0_37, %c0_38], %151 {strides = array<i32>} : memref<8x32xf32, #tpu.memory_space<vmem>>, vector<8x32xf32>,
    } else {
    }
    %c1_i32 = arith.constant 1 : i32
    %8 = arith.cmpi eq, %arg0, %c1_i32 : i32
    %9 = arith.extui %8 : i1 to i32
    %c0_i32_2 = arith.constant 0 : i32
    %10 = arith.cmpi ne, %9, %c0_i32_2 : i32
    scf.if %10 {
      %c0_3 = arith.constant 0 : index
      %c0_4 = arith.constant 0 : index
      %11 = vector.load %arg9[%c0_3, %c0_4] : memref<8x32xf32, #tpu.memory_space<vmem>>, vector<8x32xf32>
      %cst = arith.constant 0.000000e+00 : f32
      %12 = vector.broadcast %cst : f32 to vector<8x32xf32>
      %13 = arith.cmpf ogt, %11, %12 : vector<8x32xf32>
      %cst_5 = arith.constant 2.000000e-01 : f32
      %14 = vector.broadcast %cst_5 : f32 to vector<8x32xf32>
      %15 = arith.mulf %14, %11 : vector<8x32xf32>
      %16 = arith.select %13, %11, %15 : vector<8x32xi1>, vector<8x32xf32>
      %c0_6 = arith.constant 0 : index
      %c0_7 = arith.constant 0 : index
      %17 = vector.load %arg6[%c0_6, %c0_7] : memref<32x1xf32, #tpu.memory_space<vmem>>, vector<32x1xf32>
      %cst_8 = arith.constant dense<0.000000e+00> : vector<8x1xf32>
      %18 = tpu.matmul %16, %17, %cst_8 {dimension_numbers = #tpu.dot_dimension_numbers<[1], [0], [0], [1], [0, 0, 1, 1], [], []>} : vector<8x32xf32>, vector<32x1xf32>, vector<8x1xf32> -> vector<8x1xf32>
      %c0_9 = arith.constant 0 : index
      %c0_10 = arith.constant 0 : index
      %19 = vector.load %arg7[%c0_9, %c0_10] : memref<1x1xf32, #tpu.memory_space<vmem>>, vector<1x1xf32>
      %20 = vector.broadcast %19 : vector<1x1xf32> to vector<8x1xf32>
      %21 = arith.addf %18, %20 : vector<8x1xf32>
      %c0_11 = arith.constant 0 : index
      %c0_12 = arith.constant 0 : index
      %22 = vector.load %arg8[%c0_11, %c0_12] : memref<8x1xf32, #tpu.memory_space<vmem>>, vector<8x1xf32>
      tpu.vector_store %arg8[%c0_11, %c0_12], %21 {strides = array<i32>} : memref<8x1xf32, #tpu.memory_space<vmem>>, vector<8x1xf32>,
    } else {
    }
    return
  }
  func.func @transform_0(%arg0: i32, %arg1: memref<1xi32, #tpu.memory_space<smem>>) -> (i32, i32) {
    %c0_i32 = arith.constant 0 : i32
    %c0_i32_0 = arith.constant 0 : i32
    %c0_i32_1 = arith.constant 0 : i32
    return %c0_i32, %c0_i32_0 : i32, i32
  }
  func.func @transform_1(%arg0: i32, %arg1: memref<1xi32, #tpu.memory_space<smem>>) -> (i32, i32) {
    %c0 = arith.constant 0 : index
    %0 = memref.load %arg1[%c0] : memref<1xi32, #tpu.memory_space<smem>>
    %c3_i32 = arith.constant 3 : i32
    %1 = arith.addi %0, %c3_i32 : i32
    %c4_i32 = arith.constant 4 : i32
    %2 = arith.divsi %1, %c4_i32 : i32
    %c1_i32 = arith.constant 1 : i32
    %3 = arith.subi %2, %c1_i32 : i32
    %c0_i32 = arith.constant 0 : i32
    %4 = arith.maxsi %3, %c0_i32 : i32
    %5 = arith.minsi %arg0, %4 : i32
    %c0_i32_0 = arith.constant 0 : i32
    %c0_i32_1 = arith.constant 0 : i32
    return %5, %c0_i32_0 : i32, i32
  }
  func.func @transform_2(%arg0: i32, %arg1: memref<1xi32, #tpu.memory_space<smem>>) -> (i32, i32) {
    %c0_i32 = arith.constant 0 : i32
    %c0_i32_0 = arith.constant 0 : i32
    %c0_i32_1 = arith.constant 0 : i32
    return %c0_i32, %c0_i32_0 : i32, i32
  }
  func.func @transform_3(%arg0: i32, %arg1: memref<1xi32, #tpu.memory_space<smem>>) -> (i32, i32) {
    %c0_i32 = arith.constant 0 : i32
    %c0_i32_0 = arith.constant 0 : i32
    %c0_i32_1 = arith.constant 0 : i32
    return %c0_i32, %c0_i32_0 : i32, i32
  }
  func.func @transform_4(%arg0: i32, %arg1: memref<1xi32, #tpu.memory_space<smem>>) -> (i32, i32) {
    %c0_i32 = arith.constant 0 : i32
    %c0_i32_0 = arith.constant 0 : i32
    %c0_i32_1 = arith.constant 0 : i32
    return %c0_i32, %c0_i32_0 : i32, i32
  }
  func.func @transform_5(%arg0: i32, %arg1: memref<1xi32, #tpu.memory_space<smem>>) -> (i32, i32) {
    %c0_i32 = arith.constant 0 : i32
    %c0_i32_0 = arith.constant 0 : i32
    %c0_i32_1 = arith.constant 0 : i32
    return %c0_i32, %c0_i32_0 : i32, i32
  }
  func.func @transform_6(%arg0: i32, %arg1: memref<1xi32, #tpu.memory_space<smem>>) -> (i32, i32) {
    %c0_i32 = arith.constant 0 : i32
    %c0_i32_0 = arith.constant 0 : i32
    %c0_i32_1 = arith.constant 0 : i32
    return %c0_i32, %c0_i32_0 : i32, i32
  }
}

</mosaic_0001>

<bundles_post_ra>
// kernel: tpu_custom_call.1
= control target key start
LH: loop header
LB: loop body
LE: loop exit
PB: predicated region body
PF: predicated region fallthrough
CT: control target
= control target key end

     0   :  { %s1199_s28 = smov 0   ;;  %s1334_s0 = inlined_call_operand.<no memory space> [shape: s32[1], index: 0, kind: input, shape index: {}]   ;;  %s1335_s1 = inlined_call_operand.vmem [shape: s32[8,1], index: 1, kind: input, shape index: {}]   ;;  %s1336_s2 = inlined_call_operand.vmem [shape: bf16[64,17], index: 2, kind: input, shape index: {}]   ;;  %s1337_s3 = inlined_call_operand.vmem [shape: bf16[17,128], index: 3, kind: input, shape index: {}]   ;;  %s1338_s4 = inlined_call_operand.vmem [shape: bf16[32,128], index: 4, kind: input, shape index: {}]   ;;  %s1339_s5 = inlined_call_operand.vmem [shape: f32[32,1], index: 5, kind: input, shape index: {}]   ;;  %s1340_s6 = inlined_call_operand.<no memory space> [shape: f32[1,1], index: 6, kind: input, shape index: {}]   ;;  %s1341_s7 = inlined_call_operand.vmem [shape: f32[8,1], index: 7, kind: output, shape index: {}]  }
   0x1   :  { %12 = sst [smem:[#allocation6]] %s1334_s0  ;;  %v13_v0 = vstv %s1340_s6 }
   0x2   :  { %14 = vst [vmem:[#allocation7] sm:$0x1] %v13_v0 }
   0x3 LB: > { %s1205_s29 = sadd.s32 4294967295, %s1142_s28   ;;  %p959_p0 = scmp.ge.s32.totalorder %s1142_s28, 1  ;;  %s1142_s28 = sphi %s1199_s28, %s20_s28  }
   0x4   : > { %p264_p1 = scmp.lt.s32.totalorder %s1142_s28, 3 }
   0x6   : > { %p265_p2 = pnand %p959_p0, %p264_p1 }
   0x7   : > { %s302_s0 = sld [smem:[#allocation6]] (!%p265_p2)  ;;  %s1210_s6 = sshll.u32 (!%p265_p2), %s1205_s29, 2 }
   0x8   : > { %268 = sbr.rel (%p265_p2) target bundleno = 3051 (0xbeb), region = 44  ;;  %p965_p7 = scmp.ne.s32.totalorder (!%p265_p2), %s1205_s29, 0 }
   0xd   : > { %s303_s30 = sadd.s32 3, %s302_s0 }
   0xe   : > { %p304_p3 = scmp.lt.s32.totalorder %s303_s30, 0  ;;  %s305_s8 = ssub.s32 0, %s303_s30 }
   0xf   : > { %s960_s9 = smin.u32 %s305_s8, %s303_s30 }
  0x10   : > { %s307_s10 = sshrl.u32 %s960_s9, 2 }
  0x11   : > { %s308_s11 = ssub.s32 0, %s307_s10 }
  0x12   : > { %s1343_s11 = smov (!%p304_p3, %s308_s11), %s307_s10 }
  0x13   : > { %s961_s12 = sadd.s32 4294967295, %s1343_s11 }
  0x14   : > { %p311_p4 = scmp.gt.s32.totalorder %s961_s12, 0 }
  0x16   : > { %s1345_s12 = smov (!%p311_p4, %s961_s12), 0 }
  0x17   : > { %p313_p5 = scmp.lt.s32.totalorder %s1205_s29, %s1345_s12 }
  0x19   : > { %s314_s13 = scalar_select %p313_p5, %s1205_s29, %s1345_s12 }
  0x1b   : > { %s962_s14 = sshll.u32 %s314_s13, 2 }
  0x1c   : > { %p316_p6 = scmp.lt.s32.totalorder %s962_s14, 7  ;;  %340 = sbr.rel (%p965_p7) target bundleno = 35 (0x23), region = 48 }
  0x1e   : > { %s1347_s14 = smov (!%p316_p6, %s962_s14), 7 }
  0x1f   : > { %s963_s15 = sshll.u32 %s1347_s14, 2 }
  0x20   : > { %s1217_s18 = scalar_lea.vmem %s1336_s2, %s963_s15 }
  0x21   : > { %vm341_vm0 = vcmask 261120   ;;  %v1144_v1 = vmov 0.0  }
  0x22   : > { %342 = vst.msk [vmem:[#allocation2] sm:$0xff] %vm341_vm0, %v1144_v1  ;;  %343 = vst.msk [vmem:[#allocation3] sm:$0xff] %vm341_vm0, %v1144_v1 }
  0x23 PF: > { %p966_p8 = scmp.ge.s32.totalorder %s1210_s6, %s302_s0 }
  0x24   : > { %s1148_s27 = smov (!%p966_p8), 32   ;;  %s1149_s8 = smov (!%p966_p8), 64  }
  0x25   : > { %347 = sbr.rel (%p966_p8) target bundleno = 2839 (0xb17), region = 52  ;;  %s639_s9 = sadd.s32 (!%p966_p8), 1, %s1210_s6 }
  0x26   : > { %s724_s10 = sadd.s32 (!%p966_p8), 2, %s1210_s6  ;;  %s809_s11 = sadd.s32 (!%p966_p8), 3, %s1210_s6 }
  0x2a   : > { %v1098_v2 = vld [vmem:[%s1337_s3 + $0x8] ss:$0 sps:$4 sm:$0x11]   ;;  %vm381_vm1 = vcmask 1040384   ;;  %v1145_v3 = vmov 0   ;;  %v1100_v5 = vld [vmem:[%s1217_s18] sm:$0xff]   ;;  %v551_v33 = vstv %s1210_s6  ;;  %v640_v56 = vstv %s639_s9 }
  0x2b   : > { %v383_v4 = vsel %vm381_vm1, 65535, %v1145_v3  ;;  %1096 = vset.pattern.permute.xlu1 %v1145_v3  ;;  %1097 = vset.pattern.permute.xlu0 %v1145_v3  ;;  %v1099_v7 = vld [vmem:[%s1337_s3] sm:$0xff]   ;;  %vm374_vm2 = vcmask 138240   ;;  %v1235_v8 = vld [vmem:[%s1338_s4 + $0x8] sm:$0xff]   ;;  %v1146_v9 = vmov 0.0   ;;  %vm1147_vm3 = vmmov 0  }
  0x2c   : > { %v385_v6 = vand.u32 %v1098_v2, %v383_v4  ;;  %1032 = vmatprep.mubr.msk.bf16.mxu0 %vm374_vm2, %v1100_v5  ;;  %1036 = vmatprep.subr.bf16.mxu1 %v1146_v9  ;;  %v1242_v10 = vld [vmem:[%s1338_s4] sm:$0xff]   ;;  %v1101_v12 = vld [vmem:[%s1217_s18 + $0x8] sm:$0xff]   ;;  %vm478_vm4 = vcmask 261120   ;;  %s1150_s6 = smov 96  }
  0x2d   : > { %1037 = vmatpush3.bf16.msra.mxu1 %v1235_v8  ;;  %v461_v11 = vld [vmem:[#allocation2] sm:$0xff]  ;;  %1040 = vmatprep.mubr.msk.bf16.mxu1 %vm1147_vm3, %v1146_v9  ;;  %v462_v28 = vld [vmem:[#allocation3] sm:$0xff] }
  0x2e   : > { %1028 = vmatprep.subr.bf16.mxu0 %v385_v6  ;;  %1038 = vmatprep.subr.bf16.mxu1 %v1146_v9  ;;  %v465_v13 = vpack.c.bf16 %v461_v11, %v461_v11  ;;  %v1269_v32 = vld [vmem:[%s1335_s1] sm:$0xff] }
  0x2f   : > { %1029 = vmatpush3.bf16.msra.mxu0 %v385_v6  ;;  %vm552_vm5 = vcmp.lt.s32.totalorder %v551_v33, %v1269_v32  ;;  %vm641_vm7 = vcmp.lt.s32.totalorder %v640_v56, %v1269_v32 }
  0x30   : > { %1030 = vmatprep.subr.bf16.mxu0 %v1099_v7  ;;  %v553_v37 = vsel %vm552_vm5, 1, %v1145_v3  ;;  %v642_v58 = vsel %vm641_vm7, 1, %v1145_v3 }
  0x31   : > { %1039 = vmatpush3.bf16.msra.mxu1 %v1242_v10 }
  0x32   : > { %1052 = vmatprep.subr.bf16.mxu1 %v1146_v9 }
  0x33   : > { %1031 = vmatpush3.bf16.msra.mxu0 %v1099_v7 }
  0x34   : > { %1044 = vmatprep.subr.bf16.mxu0 %v1146_v9  ;;  %1041 = vmatmul.mubr.msk.bf16.vlgmr.msra.gmra.mxu1 %vm478_vm4, %v465_v13 }
  0x35   : > { %1053 = vmatpush3.bf16.msra.mxu1 %v1235_v8  ;;  %1056 = vmatprep.mubr.msk.bf16.mxu1 %vm1147_vm3, %v1146_v9 }
  0x36   : > { %1033 = vmatmul.mubr.msk.bf16.vlgmr.msra.gmra.mxu0 %vm374_vm2, %v1101_v12  ;;  %1054 = vmatprep.subr.bf16.mxu1 %v1146_v9 }
  0x37   : > { %1045 = vmatpush3.bf16.msra.mxu0 %v1235_v8  ;;  %1048 = vmatprep.mubr.msk.bf16.mxu0 %vm1147_vm3, %v1146_v9 }
  0x38   : > { %1046 = vmatprep.subr.bf16.mxu0 %v1146_v9 }
  0x39   : > { %1055 = vmatpush3.bf16.msra.mxu1 %v1242_v10 }
  0x3b   : > { %1047 = vmatpush3.bf16.msra.mxu0 %v1242_v10 }
  0x3c   : > { %1060 = vmatprep.subr.bf16.mxu0 %v1146_v9 }
  0xf4   : > { %v516_v15 = vpop.f32.mrf.mxu1 }
  0xf6   : > { %v1034_v14 = vpop.f32.mrf.mxu0  ;;  %v1042_v17 = vpop.f32.mrf.mxu1 }
  0xf8   : > { %v421_v16 = vpop.f32.mrf.mxu0  ;;  %v519_v19 = vpop.f32.mrf.mxu1 }
  0xfa   : > { %v1035_v18 = vpop.f32.mrf.mxu0  ;;  %v1043_v22 = vpop.f32.mrf.mxu1 }
  0xfb   : > { %v1004_v20 = vpack.c.bf16 %v1035_v18, %v1034_v14 }
  0xfc   : > { %v424_v21 = vpop.f32.mrf.mxu0 }
  0xfd   : > { %1006 = vst [vmem:[#allocation4 + $0x8] sm:$0xff] %v1004_v20   ;;  %v999_v23 = vpack.c.bf16 %v424_v21, %v421_v16  ;;  %v725_v20 = vstv %s724_s10 }
  0xfe   : > { %vm726_vm9 = vcmp.lt.s32.totalorder %v725_v20, %v1269_v32 }
  0xff   : > { %1000 = vst [vmem:[#allocation4] sm:$0xff] %v999_v23   ;;  %v727_v22 = vsel %vm726_vm9, 1, %v1145_v3 }
 0x104   : > { %v650_v13 = vld [vmem:[#allocation4 + $0x8] sm:$0xff]  }
 0x105   : > { %v651_v14 = vunpack.c.l.bf16 %v650_v13 }
 0x106   : > { %v463_v24 = vld [vmem:[#allocation4] sm:$0xff]  }
 0x107   : > { %v464_v25 = vunpack.c.l.bf16 %v463_v24  ;;  %v566_v50 = vunpack.c.h.bf16 %v463_v24 }
 0x109   : > { %v522_v26 = vadd.f32 %v516_v15, %v464_v25 }
 0x10b   : > { %1104 = vtanh.f32 %v522_v26  ;;  %v980_v29 = vmul.f32 -1.442695, %v522_v26 }
 0x10d   : > { %1106 = vpow2.f32 %v980_v29 }
 0x118   : > { %v1105_v27 = vpop.eup %1104 }
 0x119   : > { %536 = vrot.lane.b32.xlu0 %v1105_v27, %s1148_s27 }
 0x11a   : > { %v1107_v30 = vpop.eup %1106 }
 0x11b   : > { %v526_v31 = vadd.f32 1.0, %v1107_v30 }
 0x11d   : > { %531 = vrot.lane.b32.xlu0 %v462_v28, %s1148_s27  ;;  %1108 = vrcp.f32 %v526_v31 }
 0x12a   : > { %v1109_v34 = vpop.eup %1108 }
 0x18b   : > { %v537_v35 = vpop.permute.xlu0 %536 }
 0x18c   : > { %v539_v36 = vmul.f32 %v1109_v34, %v537_v35 }
 0x18e   : > { %541 = vrot.lane.b32.xlu1 %v539_v36, %s1148_s27 }
 0x18f   : > { %v532_v38 = vpop.permute.xlu0 %531 }
 0x190   : > { %v534_v39 = vmul.f32 %v1109_v34, %v532_v38 }
 0x192   : > { %555 = vperm.xlu1 %1096, %v553_v37  }
 0x196   : > { %559 = vrot.lane.b32.xlu1 %v461_v11, %s1149_s8 }
 0x200   : > { %v542_v40 = vpop.permute.xlu1 %541 }
 0x201   : > { %v544_v41 = vadd.f32 %v542_v40, %v534_v39 }
 0x203   : > { %1110 = vtanh.f32 %v544_v41 }
 0x20d   : > { %v556_v43 = vpop.permute.xlu1 %555 }
 0x20e   : > { %vm557_vm6 = vcmp.eq.s32.totalorder %v556_v43, 1 }
 0x20f   : > { %v563_v1 = vsel %vm557_vm6, %v544_v41, %v532_v38  ;;  %v736_v41 = vunpack.c.h.bf16 %v650_v13 }
 0x210   : > { %v1111_v42 = vpop.eup %1110 }
 0x211   : > { %547 = vrot.lane.b32.xlu0 %v1111_v42, %s1148_s27  ;;  %v560_v45 = vpop.permute.xlu1 %559 }
 0x283   : > { %v548_v44 = vpop.permute.xlu0 %547 }
 0x284   : > { %v550_v46 = vmul.f32 %v1109_v34, %v548_v44 }
 0x286   : > { %v562_v47 = vsel %vm557_vm6, %v550_v46, %v560_v45 }
 0x287   : > { %v567_v48 = vpack.c.bf16 %v562_v47, %v562_v47 }
 0x289   : > { %569 = vrot.lane.b32.xlu0 %v567_v48, %s1149_s8 }
 0x2fb   : > { %v570_v49 = vpop.permute.xlu0 %569 }
 0x2fc   : > { %1049 = vmatmul.mubr.msk.bf16.vlgmr.msra.gmra.mxu0 %vm478_vm4, %v570_v49 }
 0x2fd   : > { %1061 = vmatpush3.bf16.msra.mxu0 %v1235_v8  ;;  %1064 = vmatprep.mubr.msk.bf16.mxu0 %vm1147_vm3, %v1146_v9 }
 0x2fe   : > { %1062 = vmatprep.subr.bf16.mxu0 %v1146_v9 }
 0x301   : > { %1063 = vmatpush3.bf16.msra.mxu0 %v1242_v10 }
 0x3bc   : > { %v608_v51 = vpop.f32.mrf.mxu0 }
 0x3bd   : > { %v614_v52 = vadd.f32 %v608_v51, %v566_v50 }
 0x3be   : > { %v1050_v53 = vpop.f32.mrf.mxu0 }
 0x3bf   : > { %1112 = vtanh.f32 %v614_v52  ;;  %v982_v59 = vmul.f32 -1.442695, %v614_v52 }
 0x3c0   : > { %v611_v54 = vpop.f32.mrf.mxu0 }
 0x3c1   : > { %1114 = vpow2.f32 %v982_v59 }
 0x3c2   : > { %v1051_v55 = vpop.f32.mrf.mxu0 }
 0x3cc   : > { %v1113_v57 = vpop.eup %1112 }
 0x3cd   : > { %624 = vrot.lane.b32.xlu1 %v1113_v57, %s1148_s27 }
 0x3ce   : > { %v1115_v60 = vpop.eup %1114 }
 0x3cf   : > { %v618_v61 = vadd.f32 1.0, %v1115_v60 }
 0x3d1   : > { %644 = vperm.xlu1 %1096, %v642_v58   ;;  %1116 = vrcp.f32 %v618_v61 }
 0x3de   : > { %v1117_v62 = vpop.eup %1116 }
 0x3df   : > { %v622_v2 = vmul.f32 %v1117_v62, %v563_v1 }
 0x43f   : > { %v625_v63 = vpop.permute.xlu1 %624 }
 0x440   : > { %v627_v0 = vmul.f32 %v1117_v62, %v625_v63 }
 0x442   : > { %629 = vrot.lane.b32.xlu0 %v627_v0, %s1148_s27 }
 0x44c   : > { %v645_v7 = vpop.permute.xlu1 %644 }
 0x44d   : > { %vm646_vm8 = vcmp.eq.s32.totalorder %v645_v7, 1 }
 0x4b4   : > { %v630_v4 = vpop.permute.xlu0 %629 }
 0x4b5   : > { %v632_v5 = vadd.f32 %v630_v4, %v622_v2 }
 0x4b7   : > { %1118 = vtanh.f32 %v632_v5  ;;  %v648_v29 = vsel %vm646_vm8, %v632_v5, %v563_v1 }
 0x4c4   : > { %v1119_v6 = vpop.eup %1118 }
 0x4c5   : > { %635 = vrot.lane.b32.xlu0 %v1119_v6, %s1148_s27 }
 0x537   : > { %v636_v8 = vpop.permute.xlu0 %635 }
 0x538   : > { %v638_v9 = vmul.f32 %v1117_v62, %v636_v8 }
 0x53a   : > { %v647_v10 = vsel %vm646_vm8, %v638_v9, %v562_v47  ;;  %v810_v47 = vstv %s809_s11 }
 0x53b   : > { %v652_v11 = vpack.c.bf16 %v647_v10, %v647_v10  ;;  %vm811_vm11 = vcmp.lt.s32.totalorder %v810_v47, %v1269_v32 }
 0x53c   : > { %v812_v49 = vsel %vm811_vm11, 1, %v1145_v3 }
 0x53d   : > { %654 = vrot.lane.b32.xlu1 %v652_v11, %s1149_s8 }
 0x5af   : > { %v655_v12 = vpop.permute.xlu1 %654 }
 0x5b0   : > { %1057 = vmatmul.mubr.msk.bf16.vlgmr.msra.gmra.mxu1 %vm478_vm4, %v655_v12 }
 0x670   : > { %v693_v15 = vpop.f32.mrf.mxu1 }
 0x671   : > { %v699_v16 = vadd.f32 %v693_v15, %v651_v14 }
 0x672   : > { %v1058_v17 = vpop.f32.mrf.mxu1 }
 0x673   : > { %1120 = vtanh.f32 %v699_v16  ;;  %v984_v23 = vmul.f32 -1.442695, %v699_v16 }
 0x674   : > { %v696_v18 = vpop.f32.mrf.mxu1 }
 0x675   : > { %1122 = vpow2.f32 %v984_v23 }
 0x676   : > { %v1059_v19 = vpop.f32.mrf.mxu1 }
 0x680   : > { %v1121_v21 = vpop.eup %1120 }
 0x681   : > { %709 = vrot.lane.b32.xlu0 %v1121_v21, %s1148_s27 }
 0x682   : > { %v1123_v24 = vpop.eup %1122 }
 0x683   : > { %v703_v25 = vadd.f32 1.0, %v1123_v24 }
 0x685   : > { %729 = vperm.xlu0 %1097, %v727_v22   ;;  %1124 = vrcp.f32 %v703_v25 }
 0x692   : > { %v1125_v26 = vpop.eup %1124 }
 0x693   : > { %v707_v30 = vmul.f32 %v1125_v26, %v648_v29 }
 0x6f3   : > { %v710_v27 = vpop.permute.xlu0 %709 }
 0x6f4   : > { %v712_v28 = vmul.f32 %v1125_v26, %v710_v27 }
 0x6f6   : > { %714 = vrot.lane.b32.xlu1 %v712_v28, %s1148_s27 }
 0x700   : > { %v730_v35 = vpop.permute.xlu0 %729 }
 0x701   : > { %vm731_vm10 = vcmp.eq.s32.totalorder %v730_v35, 1 }
 0x768   : > { %v715_v31 = vpop.permute.xlu1 %714 }
 0x769   : > { %v717_v33 = vadd.f32 %v715_v31, %v707_v30 }
 0x76b   : > { %1126 = vtanh.f32 %v717_v33  ;;  %v733_v56 = vsel %vm731_vm10, %v717_v33, %v648_v29 }
 0x778   : > { %v1127_v34 = vpop.eup %1126 }
 0x779   : > { %720 = vrot.lane.b32.xlu1 %v1127_v34, %s1148_s27 }
 0x7eb   : > { %v721_v36 = vpop.permute.xlu1 %720 }
 0x7ec   : > { %v723_v37 = vmul.f32 %v1125_v26, %v721_v36 }
 0x7ee   : > { %v732_v38 = vsel %vm731_vm10, %v723_v37, %v647_v10 }
 0x7ef   : > { %v737_v39 = vpack.c.bf16 %v732_v38, %v732_v38 }
 0x7f1   : > { %739 = vrot.lane.b32.xlu1 %v737_v39, %s1149_s8 }
 0x863   : > { %v740_v40 = vpop.permute.xlu1 %739 }
 0x864   : > { %1065 = vmatmul.mubr.msk.bf16.vlgmr.msra.gmra.mxu0 %vm478_vm4, %v740_v40 }
 0x924   : > { %v778_v42 = vpop.f32.mrf.mxu0 }
 0x925   : > { %v784_v43 = vadd.f32 %v778_v42, %v736_v41 }
 0x926   : > { %v1066_v44 = vpop.f32.mrf.mxu0 }
 0x927   : > { %1128 = vtanh.f32 %v784_v43  ;;  %v986_v50 = vmul.f32 -1.442695, %v784_v43 }
 0x928   : > { %v781_v45 = vpop.f32.mrf.mxu0 }
 0x929   : > { %1130 = vpow2.f32 %v986_v50 }
 0x92a   : > { %v1067_v46 = vpop.f32.mrf.mxu0 }
 0x934   : > { %v1129_v48 = vpop.eup %1128 }
 0x935   : > { %794 = vrot.lane.b32.xlu0 %v1129_v48, %s1148_s27 }
 0x936   : > { %v1131_v51 = vpop.eup %1130 }
 0x937   : > { %v788_v52 = vadd.f32 1.0, %v1131_v51 }
 0x939   : > { %814 = vperm.xlu0 %1097, %v812_v49   ;;  %1132 = vrcp.f32 %v788_v52 }
 0x946   : > { %v1133_v53 = vpop.eup %1132 }
 0x947   : > { %v792_v57 = vmul.f32 %v1133_v53, %v733_v56 }
 0x9a7   : > { %v795_v54 = vpop.permute.xlu0 %794 }
 0x9a8   : > { %v797_v55 = vmul.f32 %v1133_v53, %v795_v54 }
 0x9aa   : > { %799 = vrot.lane.b32.xlu1 %v797_v55, %s1148_s27 }
 0x9b4   : > { %v815_v60 = vpop.permute.xlu0 %814 }
 0x9b5   : > { %vm816_vm12 = vcmp.eq.s32.totalorder %v815_v60, 1 }
 0xa1c   : > { %v800_v32 = vpop.permute.xlu1 %799 }
 0xa1d   : > { %v802_v58 = vadd.f32 %v800_v32, %v792_v57 }
 0xa1f   : > { %1134 = vtanh.f32 %v802_v58  ;;  %v818_v3 = vsel %vm816_vm12, %v802_v58, %v733_v56 }
 0xa2c   : > { %v1135_v59 = vpop.eup %1134 }
 0xa2d   : > { %805 = vrot.lane.b32.xlu1 %v1135_v59, %s1148_s27 }
 0xa31   : > { %825 = vrot.lane.b32.xlu1 %v818_v3, %s1150_s6 }
 0xa9f   : > { %v806_v61 = vpop.permute.xlu1 %805 }
 0xaa0   : > { %v808_v62 = vmul.f32 %v1133_v53, %v806_v61 }
 0xaa2   : > { %v817_v63 = vsel %vm816_vm12, %v808_v62, %v732_v38 }
 0xaa3   : > { %820 = vrot.lane.b32.xlu0 %v817_v63, %s1149_s8  ;;  %v826_v0 = vpop.permute.xlu1 %825 }
 0xaa4   : > { %828 = vst.msk [vmem:[#allocation3] sm:$0xff] %vm478_vm4, %v826_v0 }
 0xb15   : > { %v821_v1 = vpop.permute.xlu0 %820 }
 0xb16   : > { %823 = vst.msk [vmem:[#allocation2] sm:$0xff] %vm478_vm4, %v821_v1 }
 0xb17 PF: > { %p987_p9 = scmp.ne.s32.totalorder %s1205_s29, 1 }
 0xb19   : > { %832 = sbr.rel (%p987_p9) target bundleno = 3051 (0xbeb), region = 56 }
 0xb1e   : > { %v840_v2 = vld [vmem:[%s1339_s5 + $0x18] sm:$0xff]  ;;  %v1151_v4 = vmov 0.0   ;;  %v839_v5 = vld [vmem:[%s1339_s5 + $0x10] sm:$0xff]  ;;  %vm1152_vm13 = vmmov 0   ;;  %v833_v6 = vld [vmem:[#allocation2] sm:$0xff]  ;;  %vm848_vm15 = vcmask 261120  }
 0xb1f   : > { %1068 = vmatprep.subr.mxu0 %v1151_v4  ;;  %1076 = vmatprep.mubr.msk.f32.mxu0 %vm1152_vm13, %v1151_v4  ;;  %v835_v7 = vmul.f32 0.2, %v833_v6  ;;  %v838_v8 = vld [vmem:[%s1339_s5 + $0x8] sm:$0xff]  ;;  %vm834_vm14 = vcmp.gt.f32.partialorder %v833_v6, 0.0  ;;  %v837_v9 = vld [vmem:[%s1339_s5] sm:$0xff]  ;;  %vm922_vm0 = vcmask 7168  }
 0xb20   : > { %1069 = vmatpush3.msra.mxu0 %v840_v2  ;;  %v988_v11 = vld [vmem:[#allocation7] ss:$0 sm:$0xff] }
 0xb21   : > { %1070 = vmatprep.subr.mxu0 %v1151_v4  ;;  %v836_v10 = vsel %vm834_vm14, %v833_v6, %v835_v7 }
 0xb22   : > { %1071 = vmatpush3.msra.mxu0 %v839_v5 }
 0xb23   : > { %1072 = vmatprep.subr.mxu0 %v1151_v4 }
 0xb24   : > { %1073 = vmatpush3.msra.mxu0 %v838_v8 }
 0xb25   : > { %1074 = vmatprep.subr.mxu0 %v1151_v4 }
 0xb26   : > { %1075 = vmatpush3.msra.mxu0 %v837_v9 }
 0xb27   : > { %1077 = vmatmul.mubr.msk.f32.vlgmr.msra.gmra.mxu0 %vm848_vm15, %v836_v10 }
 0xbe7   : > { %v918_v12 = vpop.f32.mrf.mxu0 }
 0xbe8   : > { %v919_v13 = vadd.f32 %v988_v11, %v918_v12 }
 0xbe9   : > { %v1078_v14 = vpop.f32.mrf.mxu0 }
 0xbea   : > { %923 = vst.msk [vmem:[%s1341_s7] sm:$0xff] %vm922_vm0, %v919_v13 }
 0xbeb PF: > { %s20_s28 = sadd.s32 1, %s1142_s28  }
 0xbec   : > { %p17_p10 = scmp.ge.s32.totalorder %s20_s28, 4  }
 0xbee   :  { %19 = sbr.rel (!%p17_p10) target bundleno = 3 (0x3), region = 85 }

</bundles_post_ra>
